<compile_context>
chip_gen: v7x
topology: tpu7x:2x2x1
jax: 0.10.0
libtpu: 0.0.40
codegen_flags: <defaults>
</compile_context>

<pallas_src>
import jax
import jax.numpy as jnp
from jax import lax
from jax.experimental import pallas as pl
from jax.experimental.pallas import tpu as pltpu


# ----------------------------------------------------------------------------
# math helpers (run inside the kernel on VMEM values)
# ----------------------------------------------------------------------------
_SQRT_HALF = 0.7071067811865476  # 1/sqrt(2)


def _gelu_exact(x):
    # PyTorch nn.GELU() (approximate='none'): 0.5 * x * (1 + erf(x / sqrt(2)))
    return 0.5 * x * (1.0 + lax.erf(x * _SQRT_HALF))


# ----------------------------------------------------------------------------
# fused kernel: expert MLP chain + LayerNorm + confidence head
# ----------------------------------------------------------------------------
def _make_expert_kernel(n_net_layers: int, ln_eps: float):
    def kernel(x_ref, *refs):
        # refs: n_net_layers*(w, b), gamma, beta, wc1, bc1, wc2_row, bc2,
        #       out_ref, conf_ref
        net = refs[: 2 * n_net_layers]
        (gamma_ref, beta_ref,
         wc1_ref, bc1_ref, wc2_ref, bc2_ref,
         out_ref, conf_ref) = refs[2 * n_net_layers:]

        # bf16 cast in-kernel (no HBM-materialized bf16 copy of x).
        h = x_ref[...].astype(jnp.bfloat16)          # (token_tile, H)

        # --- self.net: Linear -> GELU -> ... -> Linear (no act on last) ------
        for li in range(n_net_layers):
            w = net[2 * li][...]                      # bf16 (K, N)
            b = net[2 * li + 1][...]                  # f32  (1, N)
            acc = jnp.dot(h, w, preferred_element_type=jnp.float32) + b
            if li < n_net_layers - 1:
                # GELU in f32, re-pack to bf16 only as the next matmul input.
                h = _gelu_exact(acc).astype(jnp.bfloat16)
            else:
                h = acc                               # f32, feeds LayerNorm
            # nn.Dropout: identity at inference time.

        # --- nn.LayerNorm(hidden_dim), single-pass stats in f32 ---------------
        mu = jnp.mean(h, axis=-1, keepdims=True)
        ms = jnp.mean(h * h, axis=-1, keepdims=True)
        var = jnp.maximum(ms - mu * mu, 0.0)          # guard tiny cancellation
        y = (h - mu) * lax.rsqrt(var + ln_eps) * gamma_ref[...] + beta_ref[...]
        out_ref[...] = y.astype(out_ref.dtype)

        # --- confidence_estimator: Linear -> ReLU -> (VPU reduce) -> Sigmoid --
        c = jnp.dot(y.astype(jnp.bfloat16), wc1_ref[...],
                    preferred_element_type=jnp.float32) + bc1_ref[...]
        c = jnp.maximum(c, 0.0)
        # N=1 "matmul" done as an elementwise mul + lane reduce (VPU/XLU),
        # keepdims=True -> (token_tile, 1), stored directly (no relayout).
        logit = jnp.sum(c * wc2_ref[...], axis=-1, keepdims=True) + bc2_ref[...]
        conf_ref[...] = jax.nn.sigmoid(logit).astype(conf_ref.dtype)

    return kernel


# ----------------------------------------------------------------------------
# parameter construction (deterministic, synthetic, module-faithful f32)
# ----------------------------------------------------------------------------
def _net_dims(specialty: str, hidden: int, inter: int):
    if specialty in ("radiology", "pathology"):
        return [hidden, inter * 2, inter, hidden]
    elif specialty == "pharmacology":
        return [hidden, inter, inter, inter // 2, hidden]
    else:
        return [hidden, inter, inter // 2, hidden]


def init_medical_expert_params(key, specialty: str, hidden: int, inter: int):
    dims = _net_dims(specialty, hidden, inter)
    params = []
    for i in range(len(dims) - 1):
        key, k = jax.random.split(key)
        w = jax.random.normal(k, (dims[i], dims[i + 1]), jnp.float32) * 0.02
        b = jnp.zeros((1, dims[i + 1]), jnp.float32)
        params += [w, b]
    # LayerNorm(hidden)
    gamma = jnp.ones((1, hidden), jnp.float32)
    beta = jnp.zeros((1, hidden), jnp.float32)
    # confidence head: hidden -> hidden//4 -> 1   (weights stored as (in, out))
    key, k1, k2 = jax.random.split(key, 3)
    wc1 = jax.random.normal(k1, (hidden, hidden // 4), jnp.float32) * 0.02
    bc1 = jnp.zeros((1, hidden // 4), jnp.float32)
    wc2 = jax.random.normal(k2, (hidden // 4, 1), jnp.float32) * 0.02
    bc2 = jnp.zeros((1, 1), jnp.float32)
    return params + [gamma, beta, wc1, bc1, wc2, bc2], len(dims) - 1


def _prepare_kernel_params(params, n_net_layers):
    """Cast matmul weights to bf16; keep biases / LN / reduce weights in f32."""
    kp = []
    for li in range(n_net_layers):
        kp.append(params[2 * li].astype(jnp.bfloat16))
        kp.append(params[2 * li + 1].astype(jnp.float32))
    gamma, beta, wc1, bc1, wc2, bc2 = params[2 * n_net_layers:]
    kp += [
        gamma.astype(jnp.float32),
        beta.astype(jnp.float32),
        wc1.astype(jnp.bfloat16),
        bc1.astype(jnp.float32),
        wc2.reshape(1, -1).astype(jnp.float32),   # (H//4, 1) -> (1, H//4) row
        bc2.astype(jnp.float32),
    ]
    return kp


# ----------------------------------------------------------------------------
# VMEM / tiling policy
# ----------------------------------------------------------------------------
def _vmem_capacity_bytes() -> int:
    """Per-TensorCore physical VMEM; conservative fallback if query fails."""
    try:
        info = pltpu.get_tpu_info()
        for name in ("vmem_capacity_bytes", "vmem_size_bytes", "vmem_bytes"):
            cap = getattr(info, name, None)
            if cap:
                return int(cap)
    except Exception:
        pass
    return 64 * 2 ** 20  # v7x-sized (smallest current generation) -> safe everywhere


def _round_up(v: int, m: int) -> int:
    return ((v + m - 1) // m) * m


# ----------------------------------------------------------------------------
# wrapper
# ----------------------------------------------------------------------------
def medical_expert_forward(x, params, n_net_layers: int, *, token_tile: int = None,
                           ln_eps: float = 1e-5, out_dtype=jnp.float32):
    """x: (B, S, H) float -> (output (B, S, H), confidence (B, S, 1))"""
    B, S, H = x.shape
    tokens = B * S

    kparams = _prepare_kernel_params(params, n_net_layers)
    net_w = kparams[0: 2 * n_net_layers: 2]
    widest = max([int(w.shape[1]) for w in net_w] + [int(w.shape[0]) for w in net_w])
    param_bytes = sum(int(p.size) * p.dtype.itemsize for p in kparams)
    out_itemsize = jnp.dtype(out_dtype).itemsize

    vmem_ceiling = int(0.8 * _vmem_capacity_bytes())   # headroom for compiler scratch

    def _tile_bytes(t):
        # x tile (f32, double-buffered) + out tile + conf tile + rough live f32
        # intermediates for the widest layer.
        return (2 * t * H * 4 + 2 * t * H * out_itemsize + 2 * t * 4
                + 3 * t * widest * 4)

    # --- token_tile: largest that fits the budget, then keep the grid >= 2 ----
    if token_tile is None:
        token_tile = 128
        for t in (1024, 512, 256):
            if param_bytes + _tile_bytes(t) <= int(0.6 * vmem_ceiling):
                token_tile = t
                break
    token_tile = max(128, (int(token_tile) // 128) * 128)
    if tokens > 128:
        # grid >= 2 so the "parallel" axis actually spans both TCs on v7x
        # (negligible cost on 1-TC chips).
        token_tile = min(token_tile, _round_up(-(-tokens // 2), 128))
    # never let the block exceed the array (any (B, S) stays legal); ragged
    # last tiles are handled by Pallas masking.
    token_tile = min(token_tile, tokens)
    num_tiles = -(-tokens // token_tile)

    x2d = x.reshape(tokens, H)   # original dtype; bf16 cast happens in-kernel

    kernel = _make_expert_kernel(n_net_layers, ln_eps)

    x_spec = pl.BlockSpec((token_tile, H), lambda i: (i, 0))
    out_spec = pl.BlockSpec((token_tile, H), lambda i: (i, 0))
    conf_spec = pl.BlockSpec((token_tile, 1), lambda i: (i, 0))

    # --- VMEM request & cost estimate ------------------------------------------
    need = param_bytes + _tile_bytes(token_tile)
    vmem_limit = int(min(vmem_ceiling, max(32 * 2 ** 20, int(1.5 * need))))

    wc1 = kparams[2 * n_net_layers + 2]
    rows = num_tiles * token_tile
    mm_flops = 2 * rows * (sum(int(w.shape[0] * w.shape[1]) for w in net_w)
                           + int(wc1.shape[0] * wc1.shape[1]) + int(wc1.shape[1]))
    transcendentals = rows * (sum(int(w.shape[1]) for w in net_w[:-1]) + 1)
    bytes_accessed = (tokens * H * (x2d.dtype.itemsize + out_itemsize)
                      + tokens * 4 + param_bytes)
    cost = pl.CostEstimate(flops=mm_flops, transcendentals=transcendentals,
                           bytes_accessed=bytes_accessed)

    def _call(single_buffer_params: bool):
        if single_buffer_params:
            # constant-index params: fetched once, single-buffered.
            param_specs = [pl.BlockSpec(p.shape, lambda i: (0, 0),
                                        pipeline_mode=pl.Buffered(1))
                           for p in kparams]
        else:
            param_specs = [pl.BlockSpec(p.shape, lambda i: (0, 0)) for p in kparams]
        return pl.pallas_call(
            kernel,
            out_shape=(
                jax.ShapeDtypeStruct((tokens, H), out_dtype),
                jax.ShapeDtypeStruct((tokens, 1), jnp.float32),
            ),
            grid_spec=pltpu.PrefetchScalarGridSpec(
                num_scalar_prefetch=0,
                grid=(num_tiles,),
                in_specs=[x_spec] + param_specs,
                out_specs=(out_spec, conf_spec),
            ),
            compiler_params=pltpu.CompilerParams(
                dimension_semantics=("parallel",),   # shards across TCs on v7x
                vmem_limit_bytes=vmem_limit,
            ),
            cost_estimate=cost,
        )(x2d, *kparams)

    try:
        out2d, conf2d = _call(True)
    except Exception:
        # older/newer Pallas versions may reject Buffered(1); default buffering
        # is only a VMEM-footprint regression, never a correctness one.
        out2d, conf2d = _call(False)

    return out2d.reshape(B, S, H), conf2d.reshape(B, S, 1)


# ----------------------------------------------------------------------------
# reference (plain JAX, f32, module-faithful) for sanity checks
# ----------------------------------------------------------------------------
def _reference(x, params, n_net_layers, ln_eps=1e-5):
    B, S, H = x.shape
    h = x.reshape(B * S, H)
    net = params[: 2 * n_net_layers]
    gamma, beta, wc1, bc1, wc2, bc2 = params[2 * n_net_layers:]
    for li in range(n_net_layers):
        h = h @ net[2 * li] + net[2 * li + 1]
        if li < n_net_layers - 1:
            h = 0.5 * h * (1.0 + lax.erf(h * _SQRT_HALF))
    mu = h.mean(-1, keepdims=True)
    var = ((h - mu) ** 2).mean(-1, keepdims=True)
    y = (h - mu) * lax.rsqrt(var + ln_eps) * gamma + beta
    c = jnp.maximum(y @ wc1 + bc1, 0.0)
    c = jax.nn.sigmoid(c @ wc2 + bc2)
    return y.reshape(B, S, H), c.reshape(B, S, 1)


def _check(x, params, n_net_layers, token_tile=None):
    out, conf = medical_expert_forward(x, params, n_net_layers, token_tile=token_tile)
    jax.block_until_ready((out, conf))
    ref_out, ref_conf = _reference(x, params, n_net_layers)
    B, S, H = x.shape
    assert out.shape == (B, S, H) and conf.shape == (B, S, 1)
    # bf16 MXU inputs + f32 accumulation: relaxed tolerance vs the f32 reference
    # (LayerNorm amplifies relative bf16 error to ~1e-2 absolute on the output).
    assert jnp.allclose(out, ref_out, atol=7e-2, rtol=2e-2), "output mismatch"
    assert jnp.allclose(conf, ref_conf, atol=1e-2, rtol=1e-2), "confidence mismatch"


# ----------------------------------------------------------------------------
if __name__ == "__main__":
    key = jax.random.PRNGKey(0)

    # Test 1: small shapes consistent with the module ('else' branch, e.g.
    # cardiology): hidden=32, intermediate=64, x: (batch=2, seq=8, hidden=32).
    # tokens (16) < 128 -> token_tile clamps to 16, single full-array block.
    hidden, inter = 32, 64
    k_x, k_p, key = jax.random.split(key, 3)
    x_small = jax.random.normal(k_x, (2, 8, hidden), jnp.float32)
    params_c, n_layers_c = init_medical_expert_params(k_p, "cardiology", hidden, inter)
    _check(x_small, params_c, n_layers_c)

    # Test 2: 'radiology' branch, tokens (256) > 128 -> grid of 2 token tiles
    # (exercises multi-tile index maps, Buffered(1) params and "parallel"
    # megacore sharding on v7x).
    k_x2, k_p2, key = jax.random.split(key, 3)
    x_big = jax.random.normal(k_x2, (4, 64, hidden), jnp.float32)
    params_r, n_layers_r = init_medical_expert_params(k_p2, "radiology", hidden, inter)
    _check(x_big, params_r, n_layers_r)

    print("KERNEL_OK")
</pallas_src>

<mosaic_0001>
module attributes {stable_mosaic.version = 11 : i64} {
  func.func @kernel(%arg0: i32, %arg1: memref<16x32xf32, #tpu.memory_space<vmem>>, %arg2: memref<32x64xbf16, #tpu.memory_space<vmem>>, %arg3: memref<1x64xf32, #tpu.memory_space<vmem>>, %arg4: memref<64x32xbf16, #tpu.memory_space<vmem>>, %arg5: memref<1x32xf32, #tpu.memory_space<vmem>>, %arg6: memref<32x32xbf16, #tpu.memory_space<vmem>>, %arg7: memref<1x32xf32, #tpu.memory_space<vmem>>, %arg8: memref<1x32xf32, #tpu.memory_space<vmem>>, %arg9: memref<1x32xf32, #tpu.memory_space<vmem>>, %arg10: memref<32x8xbf16, #tpu.memory_space<vmem>>, %arg11: memref<1x8xf32, #tpu.memory_space<vmem>>, %arg12: memref<1x8xf32, #tpu.memory_space<vmem>>, %arg13: memref<1x1xf32, #tpu.memory_space<vmem>>, %arg14: memref<16x32xf32, #tpu.memory_space<vmem>>, %arg15: memref<16x1xf32, #tpu.memory_space<vmem>>) attributes {dimension_semantics = [#tpu.dimension_semantics<parallel>], iteration_bounds = array<i64: 1>, scalar_prefetch = 0 : i64, scratch_operands = 0 : i64, tpu.core_type = #tpu.core_type<tc>, window_params = [{transform_indices = @transform_0, window_bounds = array<i64: 16, 32>}, {pipeline_mode = #tpu.pipeline_mode<synchronous>, transform_indices = @transform_1, window_bounds = array<i64: 32, 64>}, {pipeline_mode = #tpu.pipeline_mode<synchronous>, transform_indices = @transform_2, window_bounds = array<i64: 1, 64>}, {pipeline_mode = #tpu.pipeline_mode<synchronous>, transform_indices = @transform_3, window_bounds = array<i64: 64, 32>}, {pipeline_mode = #tpu.pipeline_mode<synchronous>, transform_indices = @transform_4, window_bounds = array<i64: 1, 32>}, {pipeline_mode = #tpu.pipeline_mode<synchronous>, transform_indices = @transform_5, window_bounds = array<i64: 32, 32>}, {pipeline_mode = #tpu.pipeline_mode<synchronous>, transform_indices = @transform_6, window_bounds = array<i64: 1, 32>}, {pipeline_mode = #tpu.pipeline_mode<synchronous>, transform_indices = @transform_7, window_bounds = array<i64: 1, 32>}, {pipeline_mode = #tpu.pipeline_mode<synchronous>, transform_indices = @transform_8, window_bounds = array<i64: 1, 32>}, {pipeline_mode = #tpu.pipeline_mode<synchronous>, transform_indices = @transform_9, window_bounds = array<i64: 32, 8>}, {pipeline_mode = #tpu.pipeline_mode<synchronous>, transform_indices = @transform_10, window_bounds = array<i64: 1, 8>}, {pipeline_mode = #tpu.pipeline_mode<synchronous>, transform_indices = @transform_11, window_bounds = array<i64: 1, 8>}, {pipeline_mode = #tpu.pipeline_mode<synchronous>, transform_indices = @transform_12, window_bounds = array<i64: 1, 1>}, {transform_indices = @transform_13, window_bounds = array<i64: 16, 32>}, {transform_indices = @transform_14, window_bounds = array<i64: 16, 1>}]} {
    %c0 = arith.constant 0 : index
    %c0_0 = arith.constant 0 : index
    %0 = vector.load %arg1[%c0, %c0_0] : memref<16x32xf32, #tpu.memory_space<vmem>>, vector<16x32xf32>
    %1 = arith.truncf %0 : vector<16x32xf32> to vector<16x32xbf16>
    %c0_1 = arith.constant 0 : index
    %c0_2 = arith.constant 0 : index
    %2 = vector.load %arg2[%c0_1, %c0_2] : memref<32x64xbf16, #tpu.memory_space<vmem>>, vector<32x64xbf16>
    %c0_3 = arith.constant 0 : index
    %c0_4 = arith.constant 0 : index
    %3 = vector.load %arg3[%c0_3, %c0_4] : memref<1x64xf32, #tpu.memory_space<vmem>>, vector<1x64xf32>
    %cst = arith.constant dense<0.000000e+00> : vector<16x64xf32>
    %4 = tpu.matmul %1, %2, %cst {dimension_numbers = #tpu.dot_dimension_numbers<[1], [0], [0], [1], [0, 0, 1, 1], [], []>} : vector<16x32xbf16>, vector<32x64xbf16>, vector<16x64xf32> -> vector<16x64xf32>
    %5 = vector.broadcast %3 : vector<1x64xf32> to vector<16x64xf32>
    %6 = arith.addf %4, %5 : vector<16x64xf32>
    %cst_5 = arith.constant 5.000000e-01 : f32
    %7 = vector.broadcast %cst_5 : f32 to vector<16x64xf32>
    %8 = arith.mulf %7, %6 : vector<16x64xf32>
    %cst_6 = arith.constant 0.707106769 : f32
    %9 = vector.broadcast %cst_6 : f32 to vector<16x64xf32>
    %10 = arith.mulf %6, %9 : vector<16x64xf32>
    %11 = math.erf %10 : vector<16x64xf32>
    %cst_7 = arith.constant 1.000000e+00 : f32
    %12 = vector.broadcast %cst_7 : f32 to vector<16x64xf32>
    %13 = arith.addf %12, %11 : vector<16x64xf32>
    %14 = arith.mulf %8, %13 : vector<16x64xf32>
    %15 = arith.truncf %14 : vector<16x64xf32> to vector<16x64xbf16>
    %c0_8 = arith.constant 0 : index
    %c0_9 = arith.constant 0 : index
    %16 = vector.load %arg4[%c0_8, %c0_9] : memref<64x32xbf16, #tpu.memory_space<vmem>>, vector<64x32xbf16>
    %c0_10 = arith.constant 0 : index
    %c0_11 = arith.constant 0 : index
    %17 = vector.load %arg5[%c0_10, %c0_11] : memref<1x32xf32, #tpu.memory_space<vmem>>, vector<1x32xf32>
    %cst_12 = arith.constant dense<0.000000e+00> : vector<16x32xf32>
    %18 = tpu.matmul %15, %16, %cst_12 {dimension_numbers = #tpu.dot_dimension_numbers<[1], [0], [0], [1], [0, 0, 1, 1], [], []>} : vector<16x64xbf16>, vector<64x32xbf16>, vector<16x32xf32> -> vector<16x32xf32>
    %19 = vector.broadcast %17 : vector<1x32xf32> to vector<16x32xf32>
    %20 = arith.addf %18, %19 : vector<16x32xf32>
    %cst_13 = arith.constant 5.000000e-01 : f32
    %21 = vector.broadcast %cst_13 : f32 to vector<16x32xf32>
    %22 = arith.mulf %21, %20 : vector<16x32xf32>
    %cst_14 = arith.constant 0.707106769 : f32
    %23 = vector.broadcast %cst_14 : f32 to vector<16x32xf32>
    %24 = arith.mulf %20, %23 : vector<16x32xf32>
    %25 = math.erf %24 : vector<16x32xf32>
    %cst_15 = arith.constant 1.000000e+00 : f32
    %26 = vector.broadcast %cst_15 : f32 to vector<16x32xf32>
    %27 = arith.addf %26, %25 : vector<16x32xf32>
    %28 = arith.mulf %22, %27 : vector<16x32xf32>
    %29 = arith.truncf %28 : vector<16x32xf32> to vector<16x32xbf16>
    %c0_16 = arith.constant 0 : index
    %c0_17 = arith.constant 0 : index
    %30 = vector.load %arg6[%c0_16, %c0_17] : memref<32x32xbf16, #tpu.memory_space<vmem>>, vector<32x32xbf16>
    %c0_18 = arith.constant 0 : index
    %c0_19 = arith.constant 0 : index
    %31 = vector.load %arg7[%c0_18, %c0_19] : memref<1x32xf32, #tpu.memory_space<vmem>>, vector<1x32xf32>
    %cst_20 = arith.constant dense<0.000000e+00> : vector<16x32xf32>
    %32 = tpu.matmul %29, %30, %cst_20 {dimension_numbers = #tpu.dot_dimension_numbers<[1], [0], [0], [1], [0, 0, 1, 1], [], []>} : vector<16x32xbf16>, vector<32x32xbf16>, vector<16x32xf32> -> vector<16x32xf32>
    %33 = vector.broadcast %31 : vector<1x32xf32> to vector<16x32xf32>
    %34 = arith.addf %32, %33 : vector<16x32xf32>
    %cst_21 = arith.constant dense<0.000000e+00> : vector<16xf32>
    %35 = vector.multi_reduction <add>, %34, %cst_21 [1] : vector<16x32xf32> to vector<16xf32>
    %36 = vector.shape_cast %35 : vector<16xf32> to vector<16x1xf32>
    %cst_22 = arith.constant 3.200000e+01 : f32
    %37 = vector.broadcast %cst_22 : f32 to vector<16x1xf32>
    %38 = arith.divf %36, %37 : vector<16x1xf32>
    %39 = arith.mulf %34, %34 : vector<16x32xf32>
    %cst_23 = arith.constant dense<0.000000e+00> : vector<16xf32>
    %40 = vector.multi_reduction <add>, %39, %cst_23 [1] : vector<16x32xf32> to vector<16xf32>
    %41 = vector.shape_cast %40 : vector<16xf32> to vector<16x1xf32>
    %cst_24 = arith.constant 3.200000e+01 : f32
    %42 = vector.broadcast %cst_24 : f32 to vector<16x1xf32>
    %43 = arith.divf %41, %42 : vector<16x1xf32>
    %44 = arith.mulf %38, %38 : vector<16x1xf32>
    %45 = arith.subf %43, %44 : vector<16x1xf32>
    %cst_25 = arith.constant 0.000000e+00 : f32
    %46 = vector.broadcast %cst_25 : f32 to vector<16x1xf32>
    %47 = arith.maximumf %45, %46 : vector<16x1xf32>
    %48 = vector.broadcast %38 : vector<16x1xf32> to vector<16x32xf32>
    %49 = arith.subf %34, %48 : vector<16x32xf32>
    %cst_26 = arith.constant 9.99999974E-6 : f32
    %50 = vector.broadcast %cst_26 : f32 to vector<16x1xf32>
    %51 = arith.addf %47, %50 : vector<16x1xf32>
    %52 = math.rsqrt %51 : vector<16x1xf32>
    %53 = vector.broadcast %52 : vector<16x1xf32> to vector<16x32xf32>
    %54 = arith.mulf %49, %53 : vector<16x32xf32>
    %c0_27 = arith.constant 0 : index
    %c0_28 = arith.constant 0 : index
    %55 = vector.load %arg8[%c0_27, %c0_28] : memref<1x32xf32, #tpu.memory_space<vmem>>, vector<1x32xf32>
    %56 = vector.broadcast %55 : vector<1x32xf32> to vector<16x32xf32>
    %57 = arith.mulf %54, %56 : vector<16x32xf32>
    %c0_29 = arith.constant 0 : index
    %c0_30 = arith.constant 0 : index
    %58 = vector.load %arg9[%c0_29, %c0_30] : memref<1x32xf32, #tpu.memory_space<vmem>>, vector<1x32xf32>
    %59 = vector.broadcast %58 : vector<1x32xf32> to vector<16x32xf32>
    %60 = arith.addf %57, %59 : vector<16x32xf32>
    %c0_31 = arith.constant 0 : index
    %c0_32 = arith.constant 0 : index
    %61 = vector.load %arg14[%c0_31, %c0_32] : memref<16x32xf32, #tpu.memory_space<vmem>>, vector<16x32xf32>
    tpu.vector_store %arg14[%c0_31, %c0_32], %60 {strides = array<i32>} : memref<16x32xf32, #tpu.memory_space<vmem>>, vector<16x32xf32>,
    %62 = arith.truncf %60 : vector<16x32xf32> to vector<16x32xbf16>
    %c0_33 = arith.constant 0 : index
    %c0_34 = arith.constant 0 : index
    %63 = vector.load %arg10[%c0_33, %c0_34] : memref<32x8xbf16, #tpu.memory_space<vmem>>, vector<32x8xbf16>
    %cst_35 = arith.constant dense<0.000000e+00> : vector<16x8xf32>
    %64 = tpu.matmul %62, %63, %cst_35 {dimension_numbers = #tpu.dot_dimension_numbers<[1], [0], [0], [1], [0, 0, 1, 1], [], []>} : vector<16x32xbf16>, vector<32x8xbf16>, vector<16x8xf32> -> vector<16x8xf32>
    %c0_36 = arith.constant 0 : index
    %c0_37 = arith.constant 0 : index
    %65 = vector.load %arg11[%c0_36, %c0_37] : memref<1x8xf32, #tpu.memory_space<vmem>>, vector<1x8xf32>
    %66 = vector.broadcast %65 : vector<1x8xf32> to vector<16x8xf32>
    %67 = arith.addf %64, %66 : vector<16x8xf32>
    %cst_38 = arith.constant 0.000000e+00 : f32
    %68 = vector.broadcast %cst_38 : f32 to vector<16x8xf32>
    %69 = arith.maximumf %67, %68 : vector<16x8xf32>
    %c0_39 = arith.constant 0 : index
    %c0_40 = arith.constant 0 : index
    %70 = vector.load %arg12[%c0_39, %c0_40] : memref<1x8xf32, #tpu.memory_space<vmem>>, vector<1x8xf32>
    %71 = vector.broadcast %70 : vector<1x8xf32> to vector<16x8xf32>
    %72 = arith.mulf %69, %71 : vector<16x8xf32>
    %cst_41 = arith.constant dense<0.000000e+00> : vector<16xf32>
    %73 = vector.multi_reduction <add>, %72, %cst_41 [1] : vector<16x8xf32> to vector<16xf32>
    %74 = vector.shape_cast %73 : vector<16xf32> to vector<16x1xf32>
    %c0_42 = arith.constant 0 : index
    %c0_43 = arith.constant 0 : index
    %75 = vector.load %arg13[%c0_42, %c0_43] : memref<1x1xf32, #tpu.memory_space<vmem>>, vector<1x1xf32>
    %76 = vector.broadcast %75 : vector<1x1xf32> to vector<16x1xf32>
    %77 = arith.addf %74, %76 : vector<16x1xf32>
    %78 = arith.negf %77 : vector<16x1xf32>
    %79 = math.exp %78 : vector<16x1xf32>
    %cst_44 = arith.constant 1.000000e+00 : f32
    %80 = vector.broadcast %cst_44 : f32 to vector<16x1xf32>
    %81 = arith.addf %80, %79 : vector<16x1xf32>
    %82 = arith.divf %80, %81 : vector<16x1xf32>
    %c0_45 = arith.constant 0 : index
    %c0_46 = arith.constant 0 : index
    %83 = vector.load %arg15[%c0_45, %c0_46] : memref<16x1xf32, #tpu.memory_space<vmem>>, vector<16x1xf32>
    tpu.vector_store %arg15[%c0_45, %c0_46], %82 {strides = array<i32>} : memref<16x1xf32, #tpu.memory_space<vmem>>, vector<16x1xf32>,
    return
  }
  func.func @transform_0(%arg0: i32) -> (i32, i32) {
    %c0_i32 = arith.constant 0 : i32
    %c0_i32_0 = arith.constant 0 : i32
    return %arg0, %c0_i32 : i32, i32
  }
  func.func @transform_1(%arg0: i32) -> (i32, i32) {
    %c0_i32 = arith.constant 0 : i32
    %c0_i32_0 = arith.constant 0 : i32
    %c0_i32_1 = arith.constant 0 : i32
    return %c0_i32, %c0_i32_0 : i32, i32
  }
  func.func @transform_2(%arg0: i32) -> (i32, i32) {
    %c0_i32 = arith.constant 0 : i32
    %c0_i32_0 = arith.constant 0 : i32
    %c0_i32_1 = arith.constant 0 : i32
    return %c0_i32, %c0_i32_0 : i32, i32
  }
  func.func @transform_3(%arg0: i32) -> (i32, i32) {
    %c0_i32 = arith.constant 0 : i32
    %c0_i32_0 = arith.constant 0 : i32
    %c0_i32_1 = arith.constant 0 : i32
    return %c0_i32, %c0_i32_0 : i32, i32
  }
  func.func @transform_4(%arg0: i32) -> (i32, i32) {
    %c0_i32 = arith.constant 0 : i32
    %c0_i32_0 = arith.constant 0 : i32
    %c0_i32_1 = arith.constant 0 : i32
    return %c0_i32, %c0_i32_0 : i32, i32
  }
  func.func @transform_5(%arg0: i32) -> (i32, i32) {
    %c0_i32 = arith.constant 0 : i32
    %c0_i32_0 = arith.constant 0 : i32
    %c0_i32_1 = arith.constant 0 : i32
    return %c0_i32, %c0_i32_0 : i32, i32
  }
  func.func @transform_6(%arg0: i32) -> (i32, i32) {
    %c0_i32 = arith.constant 0 : i32
    %c0_i32_0 = arith.constant 0 : i32
    %c0_i32_1 = arith.constant 0 : i32
    return %c0_i32, %c0_i32_0 : i32, i32
  }
  func.func @transform_7(%arg0: i32) -> (i32, i32) {
    %c0_i32 = arith.constant 0 : i32
    %c0_i32_0 = arith.constant 0 : i32
    %c0_i32_1 = arith.constant 0 : i32
    return %c0_i32, %c0_i32_0 : i32, i32
  }
  func.func @transform_8(%arg0: i32) -> (i32, i32) {
    %c0_i32 = arith.constant 0 : i32
    %c0_i32_0 = arith.constant 0 : i32
    %c0_i32_1 = arith.constant 0 : i32
    return %c0_i32, %c0_i32_0 : i32, i32
  }
  func.func @transform_9(%arg0: i32) -> (i32, i32) {
    %c0_i32 = arith.constant 0 : i32
    %c0_i32_0 = arith.constant 0 : i32
    %c0_i32_1 = arith.constant 0 : i32
    return %c0_i32, %c0_i32_0 : i32, i32
  }
  func.func @transform_10(%arg0: i32) -> (i32, i32) {
    %c0_i32 = arith.constant 0 : i32
    %c0_i32_0 = arith.constant 0 : i32
    %c0_i32_1 = arith.constant 0 : i32
    return %c0_i32, %c0_i32_0 : i32, i32
  }
  func.func @transform_11(%arg0: i32) -> (i32, i32) {
    %c0_i32 = arith.constant 0 : i32
    %c0_i32_0 = arith.constant 0 : i32
    %c0_i32_1 = arith.constant 0 : i32
    return %c0_i32, %c0_i32_0 : i32, i32
  }
  func.func @transform_12(%arg0: i32) -> (i32, i32) {
    %c0_i32 = arith.constant 0 : i32
    %c0_i32_0 = arith.constant 0 : i32
    %c0_i32_1 = arith.constant 0 : i32
    return %c0_i32, %c0_i32_0 : i32, i32
  }
  func.func @transform_13(%arg0: i32) -> (i32, i32) {
    %c0_i32 = arith.constant 0 : i32
    %c0_i32_0 = arith.constant 0 : i32
    return %arg0, %c0_i32 : i32, i32
  }
  func.func @transform_14(%arg0: i32) -> (i32, i32) {
    %c0_i32 = arith.constant 0 : i32
    %c0_i32_0 = arith.constant 0 : i32
    return %arg0, %c0_i32 : i32, i32
  }
}

module attributes {stable_mosaic.version = 11 : i64} {
  func.func @kernel(%arg0: i32, %arg1: memref<16x32xf32, #tpu.memory_space<vmem>>, %arg2: memref<32x64xbf16, #tpu.memory_space<vmem>>, %arg3: memref<1x64xf32, #tpu.memory_space<vmem>>, %arg4: memref<64x32xbf16, #tpu.memory_space<vmem>>, %arg5: memref<1x32xf32, #tpu.memory_space<vmem>>, %arg6: memref<32x32xbf16, #tpu.memory_space<vmem>>, %arg7: memref<1x32xf32, #tpu.memory_space<vmem>>, %arg8: memref<1x32xf32, #tpu.memory_space<vmem>>, %arg9: memref<1x32xf32, #tpu.memory_space<vmem>>, %arg10: memref<32x8xbf16, #tpu.memory_space<vmem>>, %arg11: memref<1x8xf32, #tpu.memory_space<vmem>>, %arg12: memref<1x8xf32, #tpu.memory_space<vmem>>, %arg13: memref<1x1xf32, #tpu.memory_space<vmem>>, %arg14: memref<16x32xf32, #tpu.memory_space<vmem>>, %arg15: memref<16x1xf32, #tpu.memory_space<vmem>>) attributes {dimension_semantics = [#tpu.dimension_semantics<parallel>], iteration_bounds = array<i64: 1>, scalar_prefetch = 0 : i64, scratch_operands = 0 : i64, tpu.core_type = #tpu.core_type<tc>, window_params = [{transform_indices = @transform_0, window_bounds = array<i64: 16, 32>}, {pipeline_mode = #tpu.pipeline_mode<synchronous>, transform_indices = @transform_1, window_bounds = array<i64: 32, 64>}, {pipeline_mode = #tpu.pipeline_mode<synchronous>, transform_indices = @transform_2, window_bounds = array<i64: 1, 64>}, {pipeline_mode = #tpu.pipeline_mode<synchronous>, transform_indices = @transform_3, window_bounds = array<i64: 64, 32>}, {pipeline_mode = #tpu.pipeline_mode<synchronous>, transform_indices = @transform_4, window_bounds = array<i64: 1, 32>}, {pipeline_mode = #tpu.pipeline_mode<synchronous>, transform_indices = @transform_5, window_bounds = array<i64: 32, 32>}, {pipeline_mode = #tpu.pipeline_mode<synchronous>, transform_indices = @transform_6, window_bounds = array<i64: 1, 32>}, {pipeline_mode = #tpu.pipeline_mode<synchronous>, transform_indices = @transform_7, window_bounds = array<i64: 1, 32>}, {pipeline_mode = #tpu.pipeline_mode<synchronous>, transform_indices = @transform_8, window_bounds = array<i64: 1, 32>}, {pipeline_mode = #tpu.pipeline_mode<synchronous>, transform_indices = @transform_9, window_bounds = array<i64: 32, 8>}, {pipeline_mode = #tpu.pipeline_mode<synchronous>, transform_indices = @transform_10, window_bounds = array<i64: 1, 8>}, {pipeline_mode = #tpu.pipeline_mode<synchronous>, transform_indices = @transform_11, window_bounds = array<i64: 1, 8>}, {pipeline_mode = #tpu.pipeline_mode<synchronous>, transform_indices = @transform_12, window_bounds = array<i64: 1, 1>}, {transform_indices = @transform_13, window_bounds = array<i64: 16, 32>}, {transform_indices = @transform_14, window_bounds = array<i64: 16, 1>}]} {
    %c0 = arith.constant 0 : index
    %c0_0 = arith.constant 0 : index
    %0 = vector.load %arg1[%c0, %c0_0] : memref<16x32xf32, #tpu.memory_space<vmem>>, vector<16x32xf32>
    %1 = arith.truncf %0 : vector<16x32xf32> to vector<16x32xbf16>
    %c0_1 = arith.constant 0 : index
    %c0_2 = arith.constant 0 : index
    %2 = vector.load %arg2[%c0_1, %c0_2] : memref<32x64xbf16, #tpu.memory_space<vmem>>, vector<32x64xbf16>
    %c0_3 = arith.constant 0 : index
    %c0_4 = arith.constant 0 : index
    %3 = vector.load %arg3[%c0_3, %c0_4] : memref<1x64xf32, #tpu.memory_space<vmem>>, vector<1x64xf32>
    %cst = arith.constant dense<0.000000e+00> : vector<16x64xf32>
    %4 = tpu.matmul %1, %2, %cst {dimension_numbers = #tpu.dot_dimension_numbers<[1], [0], [0], [1], [0, 0, 1, 1], [], []>} : vector<16x32xbf16>, vector<32x64xbf16>, vector<16x64xf32> -> vector<16x64xf32>
    %5 = vector.broadcast %3 : vector<1x64xf32> to vector<16x64xf32>
    %6 = arith.addf %4, %5 : vector<16x64xf32>
    %cst_5 = arith.constant 5.000000e-01 : f32
    %7 = vector.broadcast %cst_5 : f32 to vector<16x64xf32>
    %8 = arith.mulf %7, %6 : vector<16x64xf32>
    %cst_6 = arith.constant 0.707106769 : f32
    %9 = vector.broadcast %cst_6 : f32 to vector<16x64xf32>
    %10 = arith.mulf %6, %9 : vector<16x64xf32>
    %11 = math.erf %10 : vector<16x64xf32>
    %cst_7 = arith.constant 1.000000e+00 : f32
    %12 = vector.broadcast %cst_7 : f32 to vector<16x64xf32>
    %13 = arith.addf %12, %11 : vector<16x64xf32>
    %14 = arith.mulf %8, %13 : vector<16x64xf32>
    %15 = arith.truncf %14 : vector<16x64xf32> to vector<16x64xbf16>
    %c0_8 = arith.constant 0 : index
    %c0_9 = arith.constant 0 : index
    %16 = vector.load %arg4[%c0_8, %c0_9] : memref<64x32xbf16, #tpu.memory_space<vmem>>, vector<64x32xbf16>
    %c0_10 = arith.constant 0 : index
    %c0_11 = arith.constant 0 : index
    %17 = vector.load %arg5[%c0_10, %c0_11] : memref<1x32xf32, #tpu.memory_space<vmem>>, vector<1x32xf32>
    %cst_12 = arith.constant dense<0.000000e+00> : vector<16x32xf32>
    %18 = tpu.matmul %15, %16, %cst_12 {dimension_numbers = #tpu.dot_dimension_numbers<[1], [0], [0], [1], [0, 0, 1, 1], [], []>} : vector<16x64xbf16>, vector<64x32xbf16>, vector<16x32xf32> -> vector<16x32xf32>
    %19 = vector.broadcast %17 : vector<1x32xf32> to vector<16x32xf32>
    %20 = arith.addf %18, %19 : vector<16x32xf32>
    %cst_13 = arith.constant 5.000000e-01 : f32
    %21 = vector.broadcast %cst_13 : f32 to vector<16x32xf32>
    %22 = arith.mulf %21, %20 : vector<16x32xf32>
    %cst_14 = arith.constant 0.707106769 : f32
    %23 = vector.broadcast %cst_14 : f32 to vector<16x32xf32>
    %24 = arith.mulf %20, %23 : vector<16x32xf32>
    %25 = math.erf %24 : vector<16x32xf32>
    %cst_15 = arith.constant 1.000000e+00 : f32
    %26 = vector.broadcast %cst_15 : f32 to vector<16x32xf32>
    %27 = arith.addf %26, %25 : vector<16x32xf32>
    %28 = arith.mulf %22, %27 : vector<16x32xf32>
    %29 = arith.truncf %28 : vector<16x32xf32> to vector<16x32xbf16>
    %c0_16 = arith.constant 0 : index
    %c0_17 = arith.constant 0 : index
    %30 = vector.load %arg6[%c0_16, %c0_17] : memref<32x32xbf16, #tpu.memory_space<vmem>>, vector<32x32xbf16>
    %c0_18 = arith.constant 0 : index
    %c0_19 = arith.constant 0 : index
    %31 = vector.load %arg7[%c0_18, %c0_19] : memref<1x32xf32, #tpu.memory_space<vmem>>, vector<1x32xf32>
    %cst_20 = arith.constant dense<0.000000e+00> : vector<16x32xf32>
    %32 = tpu.matmul %29, %30, %cst_20 {dimension_numbers = #tpu.dot_dimension_numbers<[1], [0], [0], [1], [0, 0, 1, 1], [], []>} : vector<16x32xbf16>, vector<32x32xbf16>, vector<16x32xf32> -> vector<16x32xf32>
    %33 = vector.broadcast %31 : vector<1x32xf32> to vector<16x32xf32>
    %34 = arith.addf %32, %33 : vector<16x32xf32>
    %cst_21 = arith.constant dense<0.000000e+00> : vector<16xf32>
    %35 = vector.multi_reduction <add>, %34, %cst_21 [1] : vector<16x32xf32> to vector<16xf32>
    %36 = vector.shape_cast %35 : vector<16xf32> to vector<16x1xf32>
    %cst_22 = arith.constant 3.200000e+01 : f32
    %37 = vector.broadcast %cst_22 : f32 to vector<16x1xf32>
    %38 = arith.divf %36, %37 : vector<16x1xf32>
    %39 = arith.mulf %34, %34 : vector<16x32xf32>
    %cst_23 = arith.constant dense<0.000000e+00> : vector<16xf32>
    %40 = vector.multi_reduction <add>, %39, %cst_23 [1] : vector<16x32xf32> to vector<16xf32>
    %41 = vector.shape_cast %40 : vector<16xf32> to vector<16x1xf32>
    %cst_24 = arith.constant 3.200000e+01 : f32
    %42 = vector.broadcast %cst_24 : f32 to vector<16x1xf32>
    %43 = arith.divf %41, %42 : vector<16x1xf32>
    %44 = arith.mulf %38, %38 : vector<16x1xf32>
    %45 = arith.subf %43, %44 : vector<16x1xf32>
    %cst_25 = arith.constant 0.000000e+00 : f32
    %46 = vector.broadcast %cst_25 : f32 to vector<16x1xf32>
    %47 = arith.maximumf %45, %46 : vector<16x1xf32>
    %48 = vector.broadcast %38 : vector<16x1xf32> to vector<16x32xf32>
    %49 = arith.subf %34, %48 : vector<16x32xf32>
    %cst_26 = arith.constant 9.99999974E-6 : f32
    %50 = vector.broadcast %cst_26 : f32 to vector<16x1xf32>
    %51 = arith.addf %47, %50 : vector<16x1xf32>
    %52 = math.rsqrt %51 : vector<16x1xf32>
    %53 = vector.broadcast %52 : vector<16x1xf32> to vector<16x32xf32>
    %54 = arith.mulf %49, %53 : vector<16x32xf32>
    %c0_27 = arith.constant 0 : index
    %c0_28 = arith.constant 0 : index
    %55 = vector.load %arg8[%c0_27, %c0_28] : memref<1x32xf32, #tpu.memory_space<vmem>>, vector<1x32xf32>
    %56 = vector.broadcast %55 : vector<1x32xf32> to vector<16x32xf32>
    %57 = arith.mulf %54, %56 : vector<16x32xf32>
    %c0_29 = arith.constant 0 : index
    %c0_30 = arith.constant 0 : index
    %58 = vector.load %arg9[%c0_29, %c0_30] : memref<1x32xf32, #tpu.memory_space<vmem>>, vector<1x32xf32>
    %59 = vector.broadcast %58 : vector<1x32xf32> to vector<16x32xf32>
    %60 = arith.addf %57, %59 : vector<16x32xf32>
    %c0_31 = arith.constant 0 : index
    %c0_32 = arith.constant 0 : index
    %61 = vector.load %arg14[%c0_31, %c0_32] : memref<16x32xf32, #tpu.memory_space<vmem>>, vector<16x32xf32>
    tpu.vector_store %arg14[%c0_31, %c0_32], %60 {strides = array<i32>} : memref<16x32xf32, #tpu.memory_space<vmem>>, vector<16x32xf32>,
    %62 = arith.truncf %60 : vector<16x32xf32> to vector<16x32xbf16>
    %c0_33 = arith.constant 0 : index
    %c0_34 = arith.constant 0 : index
    %63 = vector.load %arg10[%c0_33, %c0_34] : memref<32x8xbf16, #tpu.memory_space<vmem>>, vector<32x8xbf16>
    %cst_35 = arith.constant dense<0.000000e+00> : vector<16x8xf32>
    %64 = tpu.matmul %62, %63, %cst_35 {dimension_numbers = #tpu.dot_dimension_numbers<[1], [0], [0], [1], [0, 0, 1, 1], [], []>} : vector<16x32xbf16>, vector<32x8xbf16>, vector<16x8xf32> -> vector<16x8xf32>
    %c0_36 = arith.constant 0 : index
    %c0_37 = arith.constant 0 : index
    %65 = vector.load %arg11[%c0_36, %c0_37] : memref<1x8xf32, #tpu.memory_space<vmem>>, vector<1x8xf32>
    %66 = vector.broadcast %65 : vector<1x8xf32> to vector<16x8xf32>
    %67 = arith.addf %64, %66 : vector<16x8xf32>
    %cst_38 = arith.constant 0.000000e+00 : f32
    %68 = vector.broadcast %cst_38 : f32 to vector<16x8xf32>
    %69 = arith.maximumf %67, %68 : vector<16x8xf32>
    %c0_39 = arith.constant 0 : index
    %c0_40 = arith.constant 0 : index
    %70 = vector.load %arg12[%c0_39, %c0_40] : memref<1x8xf32, #tpu.memory_space<vmem>>, vector<1x8xf32>
    %71 = vector.broadcast %70 : vector<1x8xf32> to vector<16x8xf32>
    %72 = arith.mulf %69, %71 : vector<16x8xf32>
    %cst_41 = arith.constant dense<0.000000e+00> : vector<16xf32>
    %73 = vector.multi_reduction <add>, %72, %cst_41 [1] : vector<16x8xf32> to vector<16xf32>
    %74 = vector.shape_cast %73 : vector<16xf32> to vector<16x1xf32>
    %c0_42 = arith.constant 0 : index
    %c0_43 = arith.constant 0 : index
    %75 = vector.load %arg13[%c0_42, %c0_43] : memref<1x1xf32, #tpu.memory_space<vmem>>, vector<1x1xf32>
    %76 = vector.broadcast %75 : vector<1x1xf32> to vector<16x1xf32>
    %77 = arith.addf %74, %76 : vector<16x1xf32>
    %78 = arith.negf %77 : vector<16x1xf32>
    %79 = math.exp %78 : vector<16x1xf32>
    %cst_44 = arith.constant 1.000000e+00 : f32
    %80 = vector.broadcast %cst_44 : f32 to vector<16x1xf32>
    %81 = arith.addf %80, %79 : vector<16x1xf32>
    %82 = arith.divf %80, %81 : vector<16x1xf32>
    %c0_45 = arith.constant 0 : index
    %c0_46 = arith.constant 0 : index
    %83 = vector.load %arg15[%c0_45, %c0_46] : memref<16x1xf32, #tpu.memory_space<vmem>>, vector<16x1xf32>
    tpu.vector_store %arg15[%c0_45, %c0_46], %82 {strides = array<i32>} : memref<16x1xf32, #tpu.memory_space<vmem>>, vector<16x1xf32>,
    return
  }
  func.func @transform_0(%arg0: i32) -> (i32, i32) {
    %c0_i32 = arith.constant 0 : i32
    %c0_i32_0 = arith.constant 0 : i32
    return %arg0, %c0_i32 : i32, i32
  }
  func.func @transform_1(%arg0: i32) -> (i32, i32) {
    %c0_i32 = arith.constant 0 : i32
    %c0_i32_0 = arith.constant 0 : i32
    %c0_i32_1 = arith.constant 0 : i32
    return %c0_i32, %c0_i32_0 : i32, i32
  }
  func.func @transform_2(%arg0: i32) -> (i32, i32) {
    %c0_i32 = arith.constant 0 : i32
    %c0_i32_0 = arith.constant 0 : i32
    %c0_i32_1 = arith.constant 0 : i32
    return %c0_i32, %c0_i32_0 : i32, i32
  }
  func.func @transform_3(%arg0: i32) -> (i32, i32) {
    %c0_i32 = arith.constant 0 : i32
    %c0_i32_0 = arith.constant 0 : i32
    %c0_i32_1 = arith.constant 0 : i32
    return %c0_i32, %c0_i32_0 : i32, i32
  }
  func.func @transform_4(%arg0: i32) -> (i32, i32) {
    %c0_i32 = arith.constant 0 : i32
    %c0_i32_0 = arith.constant 0 : i32
    %c0_i32_1 = arith.constant 0 : i32
    return %c0_i32, %c0_i32_0 : i32, i32
  }
  func.func @transform_5(%arg0: i32) -> (i32, i32) {
    %c0_i32 = arith.constant 0 : i32
    %c0_i32_0 = arith.constant 0 : i32
    %c0_i32_1 = arith.constant 0 : i32
    return %c0_i32, %c0_i32_0 : i32, i32
  }
  func.func @transform_6(%arg0: i32) -> (i32, i32) {
    %c0_i32 = arith.constant 0 : i32
    %c0_i32_0 = arith.constant 0 : i32
    %c0_i32_1 = arith.constant 0 : i32
    return %c0_i32, %c0_i32_0 : i32, i32
  }
  func.func @transform_7(%arg0: i32) -> (i32, i32) {
    %c0_i32 = arith.constant 0 : i32
    %c0_i32_0 = arith.constant 0 : i32
    %c0_i32_1 = arith.constant 0 : i32
    return %c0_i32, %c0_i32_0 : i32, i32
  }
  func.func @transform_8(%arg0: i32) -> (i32, i32) {
    %c0_i32 = arith.constant 0 : i32
    %c0_i32_0 = arith.constant 0 : i32
    %c0_i32_1 = arith.constant 0 : i32
    return %c0_i32, %c0_i32_0 : i32, i32
  }
  func.func @transform_9(%arg0: i32) -> (i32, i32) {
    %c0_i32 = arith.constant 0 : i32
    %c0_i32_0 = arith.constant 0 : i32
    %c0_i32_1 = arith.constant 0 : i32
    return %c0_i32, %c0_i32_0 : i32, i32
  }
  func.func @transform_10(%arg0: i32) -> (i32, i32) {
    %c0_i32 = arith.constant 0 : i32
    %c0_i32_0 = arith.constant 0 : i32
    %c0_i32_1 = arith.constant 0 : i32
    return %c0_i32, %c0_i32_0 : i32, i32
  }
  func.func @transform_11(%arg0: i32) -> (i32, i32) {
    %c0_i32 = arith.constant 0 : i32
    %c0_i32_0 = arith.constant 0 : i32
    %c0_i32_1 = arith.constant 0 : i32
    return %c0_i32, %c0_i32_0 : i32, i32
  }
  func.func @transform_12(%arg0: i32) -> (i32, i32) {
    %c0_i32 = arith.constant 0 : i32
    %c0_i32_0 = arith.constant 0 : i32
    %c0_i32_1 = arith.constant 0 : i32
    return %c0_i32, %c0_i32_0 : i32, i32
  }
  func.func @transform_13(%arg0: i32) -> (i32, i32) {
    %c0_i32 = arith.constant 0 : i32
    %c0_i32_0 = arith.constant 0 : i32
    return %arg0, %c0_i32 : i32, i32
  }
  func.func @transform_14(%arg0: i32) -> (i32, i32) {
    %c0_i32 = arith.constant 0 : i32
    %c0_i32_0 = arith.constant 0 : i32
    return %arg0, %c0_i32 : i32, i32
  }
}

</mosaic_0001>

<bundles_post_ra>
// kernel: tpu_custom_call.1
= control target key start
LH: loop header
LB: loop body
LE: loop exit
PB: predicated region body
PF: predicated region fallthrough
CT: control target
= control target key end

     0   :  { %s795_s0 = inlined_call_operand.vmem [shape: f32[16,32], index: 0, kind: input, shape index: {}]   ;;  %s796_s1 = inlined_call_operand.vmem [shape: bf16[32,64], index: 1, kind: input, shape index: {}]   ;;  %s797_s2 = inlined_call_operand.vmem [shape: f32[1,64], index: 2, kind: input, shape index: {}]   ;;  %s798_s3 = inlined_call_operand.vmem [shape: bf16[64,32], index: 3, kind: input, shape index: {}]   ;;  %s799_s4 = inlined_call_operand.vmem [shape: f32[1,32], index: 4, kind: input, shape index: {}]   ;;  %s800_s5 = inlined_call_operand.vmem [shape: bf16[32,32], index: 5, kind: input, shape index: {}]   ;;  %s801_s6 = inlined_call_operand.vmem [shape: f32[1,32], index: 6, kind: input, shape index: {}]   ;;  %s802_s7 = inlined_call_operand.vmem [shape: f32[1,32], index: 7, kind: input, shape index: {}]   ;;  %s803_s8 = inlined_call_operand.vmem [shape: f32[1,32], index: 8, kind: input, shape index: {}]   ;;  %s804_s9 = inlined_call_operand.vmem [shape: bf16[32,8], index: 9, kind: input, shape index: {}]   ;;  %s805_s10 = inlined_call_operand.vmem [shape: f32[1,8], index: 10, kind: input, shape index: {}]   ;;  %s806_s11 = inlined_call_operand.vmem [shape: f32[1,8], index: 11, kind: input, shape index: {}]   ;;  %s807_s12 = inlined_call_operand.<no memory space> [shape: f32[1,1], index: 12, kind: input, shape index: {}]   ;;  %s808_s13 = inlined_call_operand.hbm [shape: f32[16,32], index: 13, kind: output, shape index: {0}]   ;;  %s809_s14 = inlined_call_operand.vmem [shape: f32[16,1], index: 14, kind: output, shape index: {1}]  }
   0x1   :  { %v20_v0 = vstv %s807_s12 }
   0x2   :  { %21 = vst [vmem:[#allocation2] sm:$0x1] %v20_v0 }
   0x3   :  { %v556_v1 = vld [vmem:[%s796_s1] sm:$0xff]   ;;  %v610_v2 = vmov 0.0   ;;  %v557_v3 = vld [vmem:[%s796_s1 + $0x8] sm:$0xff]   ;;  %vm611_vm0 = vmmov 0   ;;  %vm76_vm1 = vcmask 261120  }
   0x4   :  { %515 = vmatprep.subr.bf16.mxu0 %v610_v2  ;;  %523 = vmatprep.subr.bf16.mxu1 %v610_v2  ;;  %v50_v4 = vld [vmem:[%s795_s0] sm:$0xff]  ;;  %v51_v5 = vld [vmem:[%s795_s0 + $0x8] sm:$0xff] }
   0x5   :  { %516 = vmatpush3.bf16.msra.mxu0 %v556_v1  ;;  %519 = vmatprep.mubr.msk.bf16.mxu0 %vm611_vm0, %v610_v2  ;;  %v52_v6 = vpack.c.bf16 %v51_v5, %v50_v4 }
   0x6   :  { %517 = vmatprep.subr.bf16.mxu0 %v610_v2  ;;  %531 = vmatprep.mubr.msk.bf16.mxu1 %vm611_vm0, %v610_v2 }
   0x9   :  { %518 = vmatpush3.bf16.msra.mxu0 %v557_v3 }
   0xa   :  { %535 = vmatprep.subr.bf16.mxu0 %v610_v2 }
   0xb   :  { %22 = vsyncpa [#allocation4], 0  ;;  %v558_v7 = vld [vmem:[%s798_s3] sm:$0xff]   ;;  %v559_v8 = vld [vmem:[%s798_s3 + $0x8] sm:$0xff]   ;;  %vm171_vm2 = vcmask 523264   ;;  %vm426_vm3 = vcmask 64512  }
   0xc   :  { %520 = vmatmul.mubr.msk.bf16.vlgmr.msra.gmra.mrb[0].mxu0 %vm76_vm1, %v52_v6  ;;  %524 = vmatpush3.bf16.msra.mxu1 %v558_v7  ;;  %v560_v9 = vld [vmem:[%s798_s3 + $0x10] sm:$0xff]   ;;  %v561_v10 = vld [vmem:[%s798_s3 + $0x18] sm:$0xff]   ;;  %v477_v11 = vld [vmem:[%s797_s2] ss:$0 sm:$0xff] }
   0xd   :  { %539 = vmatprep.mubr.msk.bf16.mxu0 %vm611_vm0, %v610_v2  ;;  %525 = vmatprep.subr.bf16.mxu1 %v610_v2  ;;  %v562_v29 = vld [vmem:[%s800_s5] sm:$0xff]   ;;  %v563_v30 = vld [vmem:[%s800_s5 + $0x8] sm:$0xff]  }
   0xe   :  { %536 = vmatpush3.bf16.msra.mxu0 %v562_v29  ;;  %v481_v31 = vld [vmem:[%s799_s4] ss:$0 sm:$0xff]  ;;  %v565_v63 = vld [vmem:[%s804_s9 + $0x8] sm:$0xff]  }
   0xf   :  { %537 = vmatprep.subr.bf16.mxu0 %v610_v2  ;;  %v487_v49 = vld [vmem:[%s801_s6] ss:$0 sm:$0xff] }
  0x10   :  { %526 = vmatpush3.bf16.msra.mxu1 %v559_v8  ;;  %v564_v62 = vld [vmem:[%s804_s9] sm:$0xff]  }
  0x11   :  { %527 = vmatprep.subr.bf16.mxu1 %v610_v2  ;;  %v493_v29 = vld [vmem:[%s805_s10] ss:$0 sm:$0xff]  ;;  %s612_s10 = smov [#allocation3]  }
  0x12   :  { %538 = vmatpush3.bf16.msra.mxu0 %v563_v30  ;;  %s462_s23 = sshll.u32 %s612_s10, 4  ;;  %s463_s23 = int_to_ptr.vmem [resolvable:$true] %s462_s23 }
  0x13   :  { %543 = vmatprep.subr.bf16.mxu0 %v610_v2  ;;  %s586_s24 = scalar_lea.vmem %s463_s23, 256  ;;  %p591_p1 = scmp.lt.s32.totalorder %s463_s23, %s463_s23 }
  0x14   :  { %528 = vmatpush3.bf16.msra.mxu1 %v560_v9  ;;  %p587_p0 = scmp.ne.s32.totalorder %s463_s23, %s586_s24  ;;  %p592_p2 = scmp.lt.s32.totalorder %s586_s24, %s586_s24 }
  0x15   :  { %529 = vmatprep.subr.bf16.mxu1 %v610_v2 }
  0x16   :  { %p593_p3 = por %p592_p2, %p591_p1 }
  0x18   :  { %530 = vmatpush3.bf16.msra.mxu1 %v561_v10  ;;  %p594_p4 = pnand %p593_p3, %p587_p0 }
  0xdf   :  { %v114_v12 = vpop.f32.mrb[0].mxu0 }
  0xe0   :  { %v115_v13 = vadd.f32 %v477_v11, %v114_v12  ;;  %v521_v14 = vpop.f32.mrb[1].mxu0 }
  0xe1   :  { %v117_v15 = vpop.f32.mrb[2].mxu0 }
  0xe2   :  { %v123_v16 = vmul.f32 0.70710677, %v115_v13  ;;  %v118_v17 = vadd.f32 %v477_v11, %v117_v15  ;;  %v522_v18 = vpop.f32.mrb[3].mxu0  ;;  %v121_v23 = vmul.f32 0.5, %v115_v13 }
  0xe3   :  { %v491_v18 = vld [vmem:[%s802_s7] ss:$0 sm:$0xff] }
  0xe4   :  { %566 = verf.f32 %v123_v16  ;;  %v124_v19 = vmul.f32 0.70710677, %v118_v17  ;;  %v122_v24 = vmul.f32 0.5, %v118_v17 }
  0xe6   :  { %568 = verf.f32 %v124_v19 }
  0xee   :  { %v567_v20 = vpop.eup %566 }
  0xef   :  { %v127_v21 = vadd.f32 1.0, %v567_v20  ;;  %v492_v20 = vld [vmem:[%s803_s8] ss:$0 sm:$0xff] }
  0xf0   :  { %v569_v22 = vpop.eup %568 }
  0xf1   :  { %v128_v25 = vadd.f32 1.0, %v569_v22  ;;  %v129_v26 = vmul.f32 %v127_v21, %v121_v23 }
  0xf3   :  { %v130_v27 = vmul.f32 %v128_v25, %v122_v24 }
  0xf5   :  { %v131_v28 = vpack.c.bf16 %v130_v27, %v129_v26 }
  0xf7   :  { %532 = vmatmul.mubr.msk.bf16.vlgmr.msra.gmra.mrb[0].mxu1 %vm171_vm2, %v131_v28 }
 0x1ca   :  { %v209_v32 = vpop.f32.mrb[0].mxu1 }
 0x1cb   :  { %v210_v33 = vadd.f32 %v481_v31, %v209_v32  ;;  %v533_v34 = vpop.f32.mrb[1].mxu1 }
 0x1cc   :  { %v212_v35 = vpop.f32.mrb[2].mxu1  ;;  %v497_v34 = vld [vmem:[%s806_s11] ss:$0 sm:$0xff] }
 0x1cd   :  { %v218_v36 = vmul.f32 0.70710677, %v210_v33  ;;  %v213_v37 = vadd.f32 %v481_v31, %v212_v35  ;;  %v534_v38 = vpop.f32.mrb[3].mxu1  ;;  %v216_v43 = vmul.f32 0.5, %v210_v33 }
 0x1cf   :  { %570 = verf.f32 %v218_v36  ;;  %v219_v39 = vmul.f32 0.70710677, %v213_v37  ;;  %v217_v44 = vmul.f32 0.5, %v213_v37 }
 0x1d1   :  { %572 = verf.f32 %v219_v39 }
 0x1d9   :  { %v571_v40 = vpop.eup %570 }
 0x1da   :  { %v222_v41 = vadd.f32 1.0, %v571_v40 }
 0x1db   :  { %v573_v42 = vpop.eup %572 }
 0x1dc   :  { %v223_v45 = vadd.f32 1.0, %v573_v42  ;;  %v224_v46 = vmul.f32 %v222_v41, %v216_v43 }
 0x1de   :  { %v225_v47 = vmul.f32 %v223_v45, %v217_v44 }
 0x1e0   :  { %v226_v48 = vpack.c.bf16 %v225_v47, %v224_v46 }
 0x1e2   :  { %540 = vmatmul.mubr.msk.bf16.vlgmr.msra.gmra.mrb[4].mxu0 %vm76_vm1, %v226_v48 }
 0x1e3   :  { %547 = vmatprep.mubr.msk.bf16.mxu0 %vm611_vm0, %v610_v2  ;;  %544 = vmatpush3.bf16.msra.mxu0 %v564_v62 }
 0x1e4   :  { %545 = vmatprep.subr.bf16.mxu0 %v610_v2 }
 0x1e7   :  { %546 = vmatpush3.bf16.msra.mxu0 %v565_v63 }
 0x2b5   :  { %v287_v50 = vpop.f32.mrb[4].mxu0 }
 0x2b6   :  { %v288_v51 = vadd.f32 %v487_v49, %v287_v50  ;;  %v541_v52 = vpop.f32.mrb[5].mxu0 }
 0x2b7   :  { %v290_v53 = vpop.f32.mrb[6].mxu0 }
 0x2b8   :  { %v291_v54 = vadd.f32 %v487_v49, %v290_v53  ;;  %v542_v55 = vpop.f32.mrb[7].mxu0  ;;  %v294_v56 = vsel %vm76_vm1, %v288_v51, 0.0  ;;  %v303_v57 = vmul.f32 %v288_v51, %v288_v51 }
 0x2b9   :  { %295 = vadd.xlane.f32.xlu0 %v294_v56 }
 0x2ba   :  { %v305_v58 = vsel %vm76_vm1, %v303_v57, 0.0  ;;  %v304_v59 = vmul.f32 %v291_v54, %v291_v54  ;;  %v297_v60 = vsel %vm76_vm1, %v291_v54, 0.0 }
 0x2bb   :  { %306 = vadd.xlane.f32.xlu1 %v305_v58 }
 0x2bc   :  { %v308_v61 = vsel %vm76_vm1, %v304_v59, 0.0 }
 0x2bd   :  { %298 = vadd.xlane.f32.xlu0 %v297_v60 }
 0x2bf   :  { %309 = vadd.xlane.f32.xlu1 %v308_v61 }
 0x346   :  { %v296_v0 = vpop.xlane.xlu0 %295 }
 0x347   :  { %v301_v1 = vmul.f32 0.03125, %v296_v0 }
 0x348   :  { %v307_v3 = vpop.xlane.xlu1 %306 }
 0x349   :  { %v313_v4 = vmul.f32 %v301_v1, %v301_v1  ;;  %v311_v5 = vmul.f32 0.03125, %v307_v3  ;;  %v319_v2 = vsub.f32 %v288_v51, %v301_v1 }
 0x34a   :  { %v299_v6 = vpop.xlane.xlu0 %298 }
 0x34b   :  { %v315_v7 = vsub.f32 %v311_v5, %v313_v4  ;;  %v302_v8 = vmul.f32 0.03125, %v299_v6 }
 0x34c   :  { %v310_v9 = vpop.xlane.xlu1 %309 }
 0x34d   :  { %v317_v10 = vmax.f32 %v315_v7, 0.0  ;;  %v314_v11 = vmul.f32 %v302_v8, %v302_v8  ;;  %v312_v12 = vmul.f32 0.03125, %v310_v9  ;;  %v320_v21 = vsub.f32 %v291_v54, %v302_v8 }
 0x34f   :  { %v321_v13 = vadd.f32 1e-05, %v317_v10  ;;  %v316_v14 = vsub.f32 %v312_v12, %v314_v11 }
 0x351   :  { %574 = vrsqrt.f32 %v321_v13  ;;  %v318_v15 = vmax.f32 %v316_v14, 0.0 }
 0x353   :  { %v322_v16 = vadd.f32 1e-05, %v318_v15 }
 0x355   :  { %576 = vrsqrt.f32 %v322_v16 }
 0x35b   :  { %v575_v17 = vpop.eup %574 }
 0x35c   :  { %v325_v19 = vmul.f32 %v575_v17, %v319_v2 }
 0x35e   :  { %v334_v22 = vmul.f32 %v491_v18, %v325_v19 }
 0x35f   :  { %v577_v23 = vpop.eup %576 }
 0x360   :  { %v326_v24 = vmul.f32 %v577_v23, %v320_v21  ;;  %v343_v25 = vadd.f32 %v492_v20, %v334_v22 }
 0x362   :  { %v335_v26 = vmul.f32 %v491_v18, %v326_v24  ;;  %345 = vst.msk [vmem:[#allocation3] sm:$0xff] %vm76_vm1, %v343_v25 }
 0x364   :  { %v344_v27 = vadd.f32 %v492_v20, %v335_v26 }
 0x366   :  { %v347_v28 = vpack.c.bf16 %v344_v27, %v343_v25  ;;  %346 = vst.msk [vmem:[#allocation3 + $0x8] sm:$0xff] %vm76_vm1, %v344_v27 }
 0x368   :  { %548 = vmatmul.mubr.msk.bf16.vlgmr.msra.gmra.mrb[8].mxu0 %vm76_vm1, %v347_v28 }
 0x43b   :  { %v408_v30 = vpop.f32.mrb[8].mxu0 }
 0x43c   :  { %v409_v31 = vadd.f32 %v493_v29, %v408_v30  ;;  %v549_v32 = vpop.f32.mrb[9].mxu0 }
 0x43d   :  { %v411_v33 = vpop.f32.mrb[10].mxu0 }
 0x43e   :  { %v415_v35 = vmax.f32 %v409_v31, 0.0  ;;  %v412_v36 = vadd.f32 %v493_v29, %v411_v33  ;;  %v550_v37 = vpop.f32.mrb[11].mxu0 }
 0x440   :  { %v416_v38 = vmax.f32 %v412_v36, 0.0  ;;  %v424_v39 = vmul.f32 %v497_v34, %v415_v35 }
 0x442   :  { %v427_v40 = vsel %vm426_vm3, %v424_v39, 0.0  ;;  %v425_v41 = vmul.f32 %v497_v34, %v416_v38 }
 0x443   :  { %428 = vadd.xlane.f32.xlu0 %v427_v40 }
 0x444   :  { %v430_v42 = vsel %vm426_vm3, %v425_v41, 0.0 }
 0x445   :  { %431 = vadd.xlane.f32.xlu1 %v430_v42 }
 0x446   :  { %597 = shalt.err (!%p594_p4)
}
 0x447   :  { %s598_s26 = scalar_lea.hbm %s808_s13, 256 }
 0x448   :  { %p599_p5 = scmp.ne.s32.totalorder %s808_s13, %s598_s26  ;;  %p602_p6 = scmp.lt.u32.totalorder %s598_s26, %s808_s13 }
 0x44a   :  { %p604_p7 = pnand %p602_p6, %p599_p5 }
 0x44c   :  { %607 = shalt.err (!%p604_p7)
}
 0x44d   :  { %s613_s3 = smov 128   ;;  %s614_s30 = smov 8   ;;  %v498_v43 = vld [vmem:[#allocation2] ss:$0 sm:$0xff]  ;;  %vm454_vm4 = vcmask 7168  }
 0x44e   :  { %468 = dma.vmem_to_hbm [thread:$0]  %s463_s23, 256, %s808_s13, [#allocation4], %s613_s3, %s613_s3, %s614_s30  }
 0x4d0   :  { %v429_v44 = vpop.xlane.xlu0 %428 }
 0x4d1   :  { %v440_v45 = vadd.f32 %v498_v43, %v429_v44 }
 0x4d2   :  { %v432_v46 = vpop.xlane.xlu1 %431 }
 0x4d3   :  { %v499_v47 = vmul.f32 -1.442695, %v440_v45  ;;  %v441_v48 = vadd.f32 %v498_v43, %v432_v46 }
 0x4d5   :  { %578 = vpow2.f32 %v499_v47  ;;  %v500_v49 = vmul.f32 -1.442695, %v441_v48 }
 0x4d7   :  { %580 = vpow2.f32 %v500_v49 }
 0x4df   :  { %v579_v50 = vpop.eup %578 }
 0x4e0   :  { %v448_v51 = vadd.f32 1.0, %v579_v50 }
 0x4e1   :  { %v581_v52 = vpop.eup %580 }
 0x4e2   :  { %582 = vrcp.f32 %v448_v51  ;;  %v449_v53 = vadd.f32 1.0, %v581_v52 }
 0x4e4   :  { %584 = vrcp.f32 %v449_v53 }
 0x4ec   :  { %v583_v54 = vpop.eup %582 }
 0x4ed   :  { %455 = vst.msk [vmem:[%s809_s14] sm:$0xff] %vm454_vm4, %v583_v54 }
 0x4ee   :  { %v585_v55 = vpop.eup %584 }
 0x4ef   :  { %456 = vst.msk [vmem:[%s809_s14 + $0x8] sm:$0xff] %vm454_vm4, %v585_v55 }
 0x4f0   :  { %608 = dma.done.wait [#allocation4], 256  }
 0x4f1   :  { %609 = vsyncadd [#allocation4], 4294967040 }
 0x4f2   :  { %476 = vsyncpa [#allocation4], 1 }

// kernel: tpu_custom_call.1
= control target key start
LH: loop header
LB: loop body
LE: loop exit
PB: predicated region body
PF: predicated region fallthrough
CT: control target
= control target key end

     0   :  { %s795_s0 = inlined_call_operand.vmem [shape: f32[16,32], index: 0, kind: input, shape index: {}]   ;;  %s796_s1 = inlined_call_operand.vmem [shape: bf16[32,64], index: 1, kind: input, shape index: {}]   ;;  %s797_s2 = inlined_call_operand.vmem [shape: f32[1,64], index: 2, kind: input, shape index: {}]   ;;  %s798_s3 = inlined_call_operand.vmem [shape: bf16[64,32], index: 3, kind: input, shape index: {}]   ;;  %s799_s4 = inlined_call_operand.vmem [shape: f32[1,32], index: 4, kind: input, shape index: {}]   ;;  %s800_s5 = inlined_call_operand.vmem [shape: bf16[32,32], index: 5, kind: input, shape index: {}]   ;;  %s801_s6 = inlined_call_operand.vmem [shape: f32[1,32], index: 6, kind: input, shape index: {}]   ;;  %s802_s7 = inlined_call_operand.vmem [shape: f32[1,32], index: 7, kind: input, shape index: {}]   ;;  %s803_s8 = inlined_call_operand.vmem [shape: f32[1,32], index: 8, kind: input, shape index: {}]   ;;  %s804_s9 = inlined_call_operand.vmem [shape: bf16[32,8], index: 9, kind: input, shape index: {}]   ;;  %s805_s10 = inlined_call_operand.vmem [shape: f32[1,8], index: 10, kind: input, shape index: {}]   ;;  %s806_s11 = inlined_call_operand.vmem [shape: f32[1,8], index: 11, kind: input, shape index: {}]   ;;  %s807_s12 = inlined_call_operand.<no memory space> [shape: f32[1,1], index: 12, kind: input, shape index: {}]   ;;  %s808_s13 = inlined_call_operand.hbm [shape: f32[16,32], index: 13, kind: output, shape index: {0}]   ;;  %s809_s14 = inlined_call_operand.vmem [shape: f32[16,1], index: 14, kind: output, shape index: {1}]  }
   0x1   :  { %v20_v0 = vstv %s807_s12 }
   0x2   :  { %21 = vst [vmem:[#allocation2] sm:$0x1] %v20_v0 }
   0x3   :  { %v556_v1 = vld [vmem:[%s796_s1] sm:$0xff]   ;;  %v610_v2 = vmov 0.0   ;;  %v557_v3 = vld [vmem:[%s796_s1 + $0x8] sm:$0xff]   ;;  %vm611_vm0 = vmmov 0   ;;  %vm76_vm1 = vcmask 261120  }
   0x4   :  { %515 = vmatprep.subr.bf16.mxu0 %v610_v2  ;;  %523 = vmatprep.subr.bf16.mxu1 %v610_v2  ;;  %v50_v4 = vld [vmem:[%s795_s0] sm:$0xff]  ;;  %v51_v5 = vld [vmem:[%s795_s0 + $0x8] sm:$0xff] }
   0x5   :  { %516 = vmatpush3.bf16.msra.mxu0 %v556_v1  ;;  %519 = vmatprep.mubr.msk.bf16.mxu0 %vm611_vm0, %v610_v2  ;;  %v52_v6 = vpack.c.bf16 %v51_v5, %v50_v4 }
   0x6   :  { %517 = vmatprep.subr.bf16.mxu0 %v610_v2  ;;  %531 = vmatprep.mubr.msk.bf16.mxu1 %vm611_vm0, %v610_v2 }
   0x9   :  { %518 = vmatpush3.bf16.msra.mxu0 %v557_v3 }
   0xa   :  { %535 = vmatprep.subr.bf16.mxu0 %v610_v2 }
   0xb   :  { %22 = vsyncpa [#allocation4], 0  ;;  %v558_v7 = vld [vmem:[%s798_s3] sm:$0xff]   ;;  %v559_v8 = vld [vmem:[%s798_s3 + $0x8] sm:$0xff]   ;;  %vm171_vm2 = vcmask 523264   ;;  %vm426_vm3 = vcmask 64512  }
   0xc   :  { %520 = vmatmul.mubr.msk.bf16.vlgmr.msra.gmra.mrb[0].mxu0 %vm76_vm1, %v52_v6  ;;  %524 = vmatpush3.bf16.msra.mxu1 %v558_v7  ;;  %v560_v9 = vld [vmem:[%s798_s3 + $0x10] sm:$0xff]   ;;  %v561_v10 = vld [vmem:[%s798_s3 + $0x18] sm:$0xff]   ;;  %v477_v11 = vld [vmem:[%s797_s2] ss:$0 sm:$0xff] }
   0xd   :  { %539 = vmatprep.mubr.msk.bf16.mxu0 %vm611_vm0, %v610_v2  ;;  %525 = vmatprep.subr.bf16.mxu1 %v610_v2  ;;  %v562_v29 = vld [vmem:[%s800_s5] sm:$0xff]   ;;  %v563_v30 = vld [vmem:[%s800_s5 + $0x8] sm:$0xff]  }
   0xe   :  { %536 = vmatpush3.bf16.msra.mxu0 %v562_v29  ;;  %v481_v31 = vld [vmem:[%s799_s4] ss:$0 sm:$0xff]  ;;  %v565_v63 = vld [vmem:[%s804_s9 + $0x8] sm:$0xff]  }
   0xf   :  { %537 = vmatprep.subr.bf16.mxu0 %v610_v2  ;;  %v487_v49 = vld [vmem:[%s801_s6] ss:$0 sm:$0xff] }
  0x10   :  { %526 = vmatpush3.bf16.msra.mxu1 %v559_v8  ;;  %v564_v62 = vld [vmem:[%s804_s9] sm:$0xff]  }
  0x11   :  { %527 = vmatprep.subr.bf16.mxu1 %v610_v2  ;;  %v493_v29 = vld [vmem:[%s805_s10] ss:$0 sm:$0xff]  ;;  %s612_s10 = smov [#allocation3]  }
  0x12   :  { %538 = vmatpush3.bf16.msra.mxu0 %v563_v30  ;;  %s462_s23 = sshll.u32 %s612_s10, 4  ;;  %s463_s23 = int_to_ptr.vmem [resolvable:$true] %s462_s23 }
  0x13   :  { %543 = vmatprep.subr.bf16.mxu0 %v610_v2  ;;  %s586_s24 = scalar_lea.vmem %s463_s23, 256  ;;  %p591_p1 = scmp.lt.s32.totalorder %s463_s23, %s463_s23 }
  0x14   :  { %528 = vmatpush3.bf16.msra.mxu1 %v560_v9  ;;  %p587_p0 = scmp.ne.s32.totalorder %s463_s23, %s586_s24  ;;  %p592_p2 = scmp.lt.s32.totalorder %s586_s24, %s586_s24 }
  0x15   :  { %529 = vmatprep.subr.bf16.mxu1 %v610_v2 }
  0x16   :  { %p593_p3 = por %p592_p2, %p591_p1 }
  0x18   :  { %530 = vmatpush3.bf16.msra.mxu1 %v561_v10  ;;  %p594_p4 = pnand %p593_p3, %p587_p0 }
  0xdf   :  { %v114_v12 = vpop.f32.mrb[0].mxu0 }
  0xe0   :  { %v115_v13 = vadd.f32 %v477_v11, %v114_v12  ;;  %v521_v14 = vpop.f32.mrb[1].mxu0 }
  0xe1   :  { %v117_v15 = vpop.f32.mrb[2].mxu0 }
  0xe2   :  { %v123_v16 = vmul.f32 0.70710677, %v115_v13  ;;  %v118_v17 = vadd.f32 %v477_v11, %v117_v15  ;;  %v522_v18 = vpop.f32.mrb[3].mxu0  ;;  %v121_v23 = vmul.f32 0.5, %v115_v13 }
  0xe3   :  { %v491_v18 = vld [vmem:[%s802_s7] ss:$0 sm:$0xff] }
  0xe4   :  { %566 = verf.f32 %v123_v16  ;;  %v124_v19 = vmul.f32 0.70710677, %v118_v17  ;;  %v122_v24 = vmul.f32 0.5, %v118_v17 }
  0xe6   :  { %568 = verf.f32 %v124_v19 }
  0xee   :  { %v567_v20 = vpop.eup %566 }
  0xef   :  { %v127_v21 = vadd.f32 1.0, %v567_v20  ;;  %v492_v20 = vld [vmem:[%s803_s8] ss:$0 sm:$0xff] }
  0xf0   :  { %v569_v22 = vpop.eup %568 }
  0xf1   :  { %v128_v25 = vadd.f32 1.0, %v569_v22  ;;  %v129_v26 = vmul.f32 %v127_v21, %v121_v23 }
  0xf3   :  { %v130_v27 = vmul.f32 %v128_v25, %v122_v24 }
  0xf5   :  { %v131_v28 = vpack.c.bf16 %v130_v27, %v129_v26 }
  0xf7   :  { %532 = vmatmul.mubr.msk.bf16.vlgmr.msra.gmra.mrb[0].mxu1 %vm171_vm2, %v131_v28 }
 0x1ca   :  { %v209_v32 = vpop.f32.mrb[0].mxu1 }
 0x1cb   :  { %v210_v33 = vadd.f32 %v481_v31, %v209_v32  ;;  %v533_v34 = vpop.f32.mrb[1].mxu1 }
 0x1cc   :  { %v212_v35 = vpop.f32.mrb[2].mxu1  ;;  %v497_v34 = vld [vmem:[%s806_s11] ss:$0 sm:$0xff] }
 0x1cd   :  { %v218_v36 = vmul.f32 0.70710677, %v210_v33  ;;  %v213_v37 = vadd.f32 %v481_v31, %v212_v35  ;;  %v534_v38 = vpop.f32.mrb[3].mxu1  ;;  %v216_v43 = vmul.f32 0.5, %v210_v33 }
 0x1cf   :  { %570 = verf.f32 %v218_v36  ;;  %v219_v39 = vmul.f32 0.70710677, %v213_v37  ;;  %v217_v44 = vmul.f32 0.5, %v213_v37 }
 0x1d1   :  { %572 = verf.f32 %v219_v39 }
 0x1d9   :  { %v571_v40 = vpop.eup %570 }
 0x1da   :  { %v222_v41 = vadd.f32 1.0, %v571_v40 }
 0x1db   :  { %v573_v42 = vpop.eup %572 }
 0x1dc   :  { %v223_v45 = vadd.f32 1.0, %v573_v42  ;;  %v224_v46 = vmul.f32 %v222_v41, %v216_v43 }
 0x1de   :  { %v225_v47 = vmul.f32 %v223_v45, %v217_v44 }
 0x1e0   :  { %v226_v48 = vpack.c.bf16 %v225_v47, %v224_v46 }
 0x1e2   :  { %540 = vmatmul.mubr.msk.bf16.vlgmr.msra.gmra.mrb[4].mxu0 %vm76_vm1, %v226_v48 }
 0x1e3   :  { %547 = vmatprep.mubr.msk.bf16.mxu0 %vm611_vm0, %v610_v2  ;;  %544 = vmatpush3.bf16.msra.mxu0 %v564_v62 }
 0x1e4   :  { %545 = vmatprep.subr.bf16.mxu0 %v610_v2 }
 0x1e7   :  { %546 = vmatpush3.bf16.msra.mxu0 %v565_v63 }
 0x2b5   :  { %v287_v50 = vpop.f32.mrb[4].mxu0 }
 0x2b6   :  { %v288_v51 = vadd.f32 %v487_v49, %v287_v50  ;;  %v541_v52 = vpop.f32.mrb[5].mxu0 }
 0x2b7   :  { %v290_v53 = vpop.f32.mrb[6].mxu0 }
 0x2b8   :  { %v291_v54 = vadd.f32 %v487_v49, %v290_v53  ;;  %v542_v55 = vpop.f32.mrb[7].mxu0  ;;  %v294_v56 = vsel %vm76_vm1, %v288_v51, 0.0  ;;  %v303_v57 = vmul.f32 %v288_v51, %v288_v51 }
 0x2b9   :  { %295 = vadd.xlane.f32.xlu0 %v294_v56 }
 0x2ba   :  { %v305_v58 = vsel %vm76_vm1, %v303_v57, 0.0  ;;  %v304_v59 = vmul.f32 %v291_v54, %v291_v54  ;;  %v297_v60 = vsel %vm76_vm1, %v291_v54, 0.0 }
 0x2bb   :  { %306 = vadd.xlane.f32.xlu1 %v305_v58 }
 0x2bc   :  { %v308_v61 = vsel %vm76_vm1, %v304_v59, 0.0 }
 0x2bd   :  { %298 = vadd.xlane.f32.xlu0 %v297_v60 }
 0x2bf   :  { %309 = vadd.xlane.f32.xlu1 %v308_v61 }
 0x346   :  { %v296_v0 = vpop.xlane.xlu0 %295 }
 0x347   :  { %v301_v1 = vmul.f32 0.03125, %v296_v0 }
 0x348   :  { %v307_v3 = vpop.xlane.xlu1 %306 }
 0x349   :  { %v313_v4 = vmul.f32 %v301_v1, %v301_v1  ;;  %v311_v5 = vmul.f32 0.03125, %v307_v3  ;;  %v319_v2 = vsub.f32 %v288_v51, %v301_v1 }
 0x34a   :  { %v299_v6 = vpop.xlane.xlu0 %298 }
 0x34b   :  { %v315_v7 = vsub.f32 %v311_v5, %v313_v4  ;;  %v302_v8 = vmul.f32 0.03125, %v299_v6 }
 0x34c   :  { %v310_v9 = vpop.xlane.xlu1 %309 }
 0x34d   :  { %v317_v10 = vmax.f32 %v315_v7, 0.0  ;;  %v314_v11 = vmul.f32 %v302_v8, %v302_v8  ;;  %v312_v12 = vmul.f32 0.03125, %v310_v9  ;;  %v320_v21 = vsub.f32 %v291_v54, %v302_v8 }
 0x34f   :  { %v321_v13 = vadd.f32 1e-05, %v317_v10  ;;  %v316_v14 = vsub.f32 %v312_v12, %v314_v11 }
 0x351   :  { %574 = vrsqrt.f32 %v321_v13  ;;  %v318_v15 = vmax.f32 %v316_v14, 0.0 }
 0x353   :  { %v322_v16 = vadd.f32 1e-05, %v318_v15 }
 0x355   :  { %576 = vrsqrt.f32 %v322_v16 }
 0x35b   :  { %v575_v17 = vpop.eup %574 }
 0x35c   :  { %v325_v19 = vmul.f32 %v575_v17, %v319_v2 }
 0x35e   :  { %v334_v22 = vmul.f32 %v491_v18, %v325_v19 }
 0x35f   :  { %v577_v23 = vpop.eup %576 }
 0x360   :  { %v326_v24 = vmul.f32 %v577_v23, %v320_v21  ;;  %v343_v25 = vadd.f32 %v492_v20, %v334_v22 }
 0x362   :  { %v335_v26 = vmul.f32 %v491_v18, %v326_v24  ;;  %345 = vst.msk [vmem:[#allocation3] sm:$0xff] %vm76_vm1, %v343_v25 }
 0x364   :  { %v344_v27 = vadd.f32 %v492_v20, %v335_v26 }
 0x366   :  { %v347_v28 = vpack.c.bf16 %v344_v27, %v343_v25  ;;  %346 = vst.msk [vmem:[#allocation3 + $0x8] sm:$0xff] %vm76_vm1, %v344_v27 }
 0x368   :  { %548 = vmatmul.mubr.msk.bf16.vlgmr.msra.gmra.mrb[8].mxu0 %vm76_vm1, %v347_v28 }
 0x43b   :  { %v408_v30 = vpop.f32.mrb[8].mxu0 }
 0x43c   :  { %v409_v31 = vadd.f32 %v493_v29, %v408_v30  ;;  %v549_v32 = vpop.f32.mrb[9].mxu0 }
 0x43d   :  { %v411_v33 = vpop.f32.mrb[10].mxu0 }
 0x43e   :  { %v415_v35 = vmax.f32 %v409_v31, 0.0  ;;  %v412_v36 = vadd.f32 %v493_v29, %v411_v33  ;;  %v550_v37 = vpop.f32.mrb[11].mxu0 }
 0x440   :  { %v416_v38 = vmax.f32 %v412_v36, 0.0  ;;  %v424_v39 = vmul.f32 %v497_v34, %v415_v35 }
 0x442   :  { %v427_v40 = vsel %vm426_vm3, %v424_v39, 0.0  ;;  %v425_v41 = vmul.f32 %v497_v34, %v416_v38 }
 0x443   :  { %428 = vadd.xlane.f32.xlu0 %v427_v40 }
 0x444   :  { %v430_v42 = vsel %vm426_vm3, %v425_v41, 0.0 }
 0x445   :  { %431 = vadd.xlane.f32.xlu1 %v430_v42 }
 0x446   :  { %597 = shalt.err (!%p594_p4)
}
 0x447   :  { %s598_s26 = scalar_lea.hbm %s808_s13, 256 }
 0x448   :  { %p599_p5 = scmp.ne.s32.totalorder %s808_s13, %s598_s26  ;;  %p602_p6 = scmp.lt.u32.totalorder %s598_s26, %s808_s13 }
 0x44a   :  { %p604_p7 = pnand %p602_p6, %p599_p5 }
 0x44c   :  { %607 = shalt.err (!%p604_p7)
}
 0x44d   :  { %s613_s3 = smov 128   ;;  %s614_s30 = smov 8   ;;  %v498_v43 = vld [vmem:[#allocation2] ss:$0 sm:$0xff]  ;;  %vm454_vm4 = vcmask 7168  }
 0x44e   :  { %468 = dma.vmem_to_hbm [thread:$0]  %s463_s23, 256, %s808_s13, [#allocation4], %s613_s3, %s613_s3, %s614_s30  }
 0x4d0   :  { %v429_v44 = vpop.xlane.xlu0 %428 }
 0x4d1   :  { %v440_v45 = vadd.f32 %v498_v43, %v429_v44 }
 0x4d2   :  { %v432_v46 = vpop.xlane.xlu1 %431 }
 0x4d3   :  { %v499_v47 = vmul.f32 -1.442695, %v440_v45  ;;  %v441_v48 = vadd.f32 %v498_v43, %v432_v46 }
 0x4d5   :  { %578 = vpow2.f32 %v499_v47  ;;  %v500_v49 = vmul.f32 -1.442695, %v441_v48 }
 0x4d7   :  { %580 = vpow2.f32 %v500_v49 }
 0x4df   :  { %v579_v50 = vpop.eup %578 }
 0x4e0   :  { %v448_v51 = vadd.f32 1.0, %v579_v50 }
 0x4e1   :  { %v581_v52 = vpop.eup %580 }
 0x4e2   :  { %582 = vrcp.f32 %v448_v51  ;;  %v449_v53 = vadd.f32 1.0, %v581_v52 }
 0x4e4   :  { %584 = vrcp.f32 %v449_v53 }
 0x4ec   :  { %v583_v54 = vpop.eup %582 }
 0x4ed   :  { %455 = vst.msk [vmem:[%s809_s14] sm:$0xff] %vm454_vm4, %v583_v54 }
 0x4ee   :  { %v585_v55 = vpop.eup %584 }
 0x4ef   :  { %456 = vst.msk [vmem:[%s809_s14 + $0x8] sm:$0xff] %vm454_vm4, %v585_v55 }
 0x4f0   :  { %608 = dma.done.wait [#allocation4], 256  }
 0x4f1   :  { %609 = vsyncadd [#allocation4], 4294967040 }
 0x4f2   :  { %476 = vsyncpa [#allocation4], 1 }

</bundles_post_ra>
